<compile_context>
chip_gen: v5e
topology: v5e:2x2
jax: 0.10.0
libtpu: 0.0.40
codegen_flags: <defaults>
</compile_context>

<pallas_src>
import jax
import jax.numpy as jnp
from jax.experimental import pallas as pl
from jax.experimental.pallas import tpu as pltpu

# Problem sizes (small, consistent with the module's forward)
B, C_IN, H, W = 2, 4, 16, 16
C_OUT, KH, KW = 8, 3, 3
K_AUG = C_IN * KH * KW + 1      # 36 conv taps + 1 bias row = 37
N_COLS = B * H * W              # 512 columns (lane-dense, multiple of 128)


def _conv_matmul_kernel(w_ref, cols_ref, o_ref):
    # --- QuantStub / DeQuantStub: identity pass-throughs in float eager mode ---
    # w_ref:    (C_OUT, K_AUG)   weights with bias folded in as last column
    # cols_ref: (K_AUG, N_COLS)  im2col slab with a trailing row of ones
    # o_ref:    (C_OUT, N_COLS)  lane-dense output slab
    o_ref[...] = jnp.dot(
        w_ref[...], cols_ref[...], preferred_element_type=jnp.float32
    ).astype(o_ref.dtype)


def quant_stub_wrapper_forward(x, weight, bias):
    """x: (B, C_IN, H, W) f32 NCHW -> (B, C_OUT, H, W) f32."""
    b, c_in, h, w = x.shape
    assert (b, c_in, h, w) == (B, C_IN, H, W)

    # ---- wrapper-side im2col (XLA fuses pad + shifted-window gather) ----
    x_pad = jnp.pad(x, ((0, 0), (0, 0), (1, 1), (1, 1)))
    patches = [x_pad[:, :, kh:kh + H, kw:kw + W]          # each (B, C_IN, H, W)
               for kh in range(KH) for kw in range(KW)]
    cols = jnp.stack(patches, axis=2)                      # (B, C_IN, 9, H, W)
    cols = cols.transpose(1, 2, 0, 3, 4).reshape(C_IN * KH * KW, N_COLS)
    # Bias folded in as an extra contraction row of ones.
    cols_aug = jnp.concatenate(
        [cols, jnp.ones((1, N_COLS), cols.dtype)], axis=0)          # (37, 512)
    w_aug = jnp.concatenate(
        [weight.reshape(C_OUT, C_IN * KH * KW), bias.reshape(C_OUT, 1)],
        axis=1)                                                     # (8, 37)

    out_flat = pl.pallas_call(
        _conv_matmul_kernel,
        out_shape=jax.ShapeDtypeStruct((C_OUT, N_COLS), x.dtype),
        grid_spec=pltpu.PrefetchScalarGridSpec(
            num_scalar_prefetch=0,
            grid=(1,),  # whole problem in one step; everything fits in VMEM
            in_specs=[
                pl.BlockSpec((C_OUT, K_AUG), lambda i: (0, 0)),
                pl.BlockSpec((K_AUG, N_COLS), lambda i: (0, 0)),
            ],
            out_specs=pl.BlockSpec((C_OUT, N_COLS), lambda i: (0, 0)),
        ),
        compiler_params=pltpu.CompilerParams(
            dimension_semantics=("arbitrary",)),
        cost_estimate=pl.CostEstimate(
            flops=2 * C_OUT * K_AUG * N_COLS,
            transcendentals=0,
            bytes_accessed=4 * (C_OUT * K_AUG + K_AUG * N_COLS
                                + C_OUT * N_COLS)),
    )(w_aug, cols_aug)

    # Columns are ordered (b, h, w): un-flatten back to NCHW in the wrapper.
    return out_flat.reshape(C_OUT, B, H, W).transpose(1, 0, 2, 3)


if __name__ == "__main__":
    key = jax.random.PRNGKey(0)
    kx, kw_, kb = jax.random.split(key, 3)

    # Deterministic parameter init (PyTorch-like kaiming-uniform scale).
    fan_in = C_IN * KH * KW
    bound = 1.0 / (fan_in ** 0.5)
    x = jax.random.normal(kx, (B, C_IN, H, W), dtype=jnp.float32)
    weight = jax.random.uniform(kw_, (C_OUT, C_IN, KH, KW), jnp.float32,
                                -bound, bound)
    bias = jax.random.uniform(kb, (C_OUT,), jnp.float32, -bound, bound)

    out = quant_stub_wrapper_forward(x, weight, bias)
    out = jax.block_until_ready(out)

    # Pure-JAX reference (QuantStub/DeQuantStub are identity; conv2d same-pad).
    ref = jax.lax.conv_general_dilated(
        x, weight, window_strides=(1, 1), padding="SAME",
        dimension_numbers=("NCHW", "OIHW", "NCHW"),
    ) + bias.reshape(1, C_OUT, 1, 1)

    assert out.shape == (B, C_OUT, H, W)
    assert jnp.allclose(out, ref, atol=1e-5, rtol=1e-5)
    print("KERNEL_OK")
</pallas_src>

<mosaic_0001>
module attributes {stable_mosaic.version = 11 : i64} {
  func.func @_conv_matmul_kernel(%arg0: i32, %arg1: memref<8x37xf32, #tpu.memory_space<vmem>>, %arg2: memref<37x512xf32, #tpu.memory_space<vmem>>, %arg3: memref<8x512xf32, #tpu.memory_space<vmem>>) attributes {dimension_semantics = [#tpu.dimension_semantics<arbitrary>], iteration_bounds = array<i64: 1>, scalar_prefetch = 0 : i64, scratch_operands = 0 : i64, tpu.core_type = #tpu.core_type<tc>, window_params = [{pipeline_mode = #tpu.pipeline_mode<synchronous>, transform_indices = @transform_0, window_bounds = array<i64: 8, 37>}, {pipeline_mode = #tpu.pipeline_mode<synchronous>, transform_indices = @transform_1, window_bounds = array<i64: 37, 512>}, {pipeline_mode = #tpu.pipeline_mode<synchronous>, transform_indices = @transform_2, window_bounds = array<i64: 8, 512>}]} {
    %c0 = arith.constant 0 : index
    %c0_0 = arith.constant 0 : index
    %0 = vector.load %arg1[%c0, %c0_0] : memref<8x37xf32, #tpu.memory_space<vmem>>, vector<8x37xf32>
    %c0_1 = arith.constant 0 : index
    %c0_2 = arith.constant 0 : index
    %1 = vector.load %arg2[%c0_1, %c0_2] : memref<37x512xf32, #tpu.memory_space<vmem>>, vector<37x512xf32>
    %cst = arith.constant dense<0.000000e+00> : vector<8x512xf32>
    %2 = tpu.matmul %0, %1, %cst {dimension_numbers = #tpu.dot_dimension_numbers<[1], [0], [0], [1], [0, 0, 1, 1], [], []>} : vector<8x37xf32>, vector<37x512xf32>, vector<8x512xf32> -> vector<8x512xf32>
    %c0_3 = arith.constant 0 : index
    %c0_4 = arith.constant 0 : index
    %3 = vector.load %arg3[%c0_3, %c0_4] : memref<8x512xf32, #tpu.memory_space<vmem>>, vector<8x512xf32>
    tpu.vector_store %arg3[%c0_3, %c0_4], %2 {strides = array<i32>} : memref<8x512xf32, #tpu.memory_space<vmem>>, vector<8x512xf32>,
    return
  }
  func.func @transform_0(%arg0: i32) -> (i32, i32) {
    %c0_i32 = arith.constant 0 : i32
    %c0_i32_0 = arith.constant 0 : i32
    %c0_i32_1 = arith.constant 0 : i32
    return %c0_i32, %c0_i32_0 : i32, i32
  }
  func.func @transform_1(%arg0: i32) -> (i32, i32) {
    %c0_i32 = arith.constant 0 : i32
    %c0_i32_0 = arith.constant 0 : i32
    %c0_i32_1 = arith.constant 0 : i32
    return %c0_i32, %c0_i32_0 : i32, i32
  }
  func.func @transform_2(%arg0: i32) -> (i32, i32) {
    %c0_i32 = arith.constant 0 : i32
    %c0_i32_0 = arith.constant 0 : i32
    %c0_i32_1 = arith.constant 0 : i32
    return %c0_i32, %c0_i32_0 : i32, i32
  }
}

</mosaic_0001>

<bundles_post_ra>
// kernel: tpu_custom_call.1
= control target key start
LH: loop header
LB: loop body
LE: loop exit
PB: predicated region body
PF: predicated region fallthrough
CT: control target
= control target key end

     0   :  { %7 = vsyncpa [#allocation3], 0  ;;  %s310_s0 = inlined_call_operand.hbm [shape: f32[8,37], index: 0, kind: input, shape index: {}]   ;;  %s311_s1 = inlined_call_operand.hbm [shape: f32[37,512], index: 1, kind: input, shape index: {}]   ;;  %s312_s2 = inlined_call_operand.hbm [shape: f32[8,512], index: 2, kind: output, shape index: {}]  }
   0x1   :  { %8 = vsyncpa [#allocation6], 0 }
   0x2   :  { %9 = vsyncpa [#allocation4], 0  ;;  %s15_s11 = sshll.u32 %s310_s0, 4  ;;  %s273_s12 = smov [#allocation2]   ;;  %s16_s11 = int_to_ptr.hbm [resolvable:$true] %s15_s11 }
   0x3   :  { %s17_s13 = sshll.u32 %s273_s12, 4  ;;  %s25_s16 = sshll.u32 %s311_s1, 4  ;;  %s18_s13 = int_to_ptr.vmem [resolvable:$true] %s17_s13  ;;  %s26_s16 = int_to_ptr.hbm [resolvable:$true] %s25_s16 }
   0x4   :  { %20 = dma.hbm_to_vmem [thread:$0]  %s16_s11, 128, %s18_s13, [#allocation3]  }
   0x5   :  { %s274_s17 = smov [#allocation5]   ;;  %s275_s19 = smov 512  }
   0x6   :  { %s27_s18 = sshll.u32 %s274_s17, 4  ;;  %s276_s20 = smov 32   ;;  %s28_s18 = int_to_ptr.vmem [resolvable:$true] %s27_s18 }
   0x7   :  { %33 = dma.hbm_to_vmem [thread:$0]  %s26_s16, 2560, %s28_s18, [#allocation6], %s275_s19, %s275_s19, %s276_s20  }
   0x8   :  { %267 = dma.done.wait [#allocation3], 128  }
   0x9   :  { %268 = vsyncadd [#allocation3], 4294967168 }
   0xa   :  { %269 = dma.done.wait [#allocation6], 2560  }
   0xb   :  { %270 = vsyncadd [#allocation6], 4294964736  ;;  %vm67_vm0 = vcmask 1044480   ;;  %v61_v0 = vld [vmem:[#allocation5 + $0x90] sm:$0x1f]  ;;  %v58_v3 = vld [vmem:[#allocation5 + $0x78] sm:$0xff] }
   0xc   :  { %v62_v1 = vld [vmem:[#allocation5 + $0x98] sm:$0x1f]  ;;  %v57_v2 = vld [vmem:[#allocation5 + $0x70] sm:$0xff]  ;;  %186 = vmatpush.msk.msra.mxu2 %vm67_vm0, %v61_v0  ;;  %v59_v6 = vld [vmem:[#allocation5 + $0x80] sm:$0x1f]  ;;  %vm63_vm1 = vcmask 302080  }
   0xd   :  { %188 = vmatpush.msk.msra.mxu3 %vm67_vm0, %v62_v1  ;;  %v53_v4 = vld [vmem:[#allocation5 + $0x50] sm:$0xff]  ;;  %v54_v5 = vld [vmem:[#allocation5 + $0x58] sm:$0xff]  ;;  %v60_v7 = vld [vmem:[#allocation5 + $0x88] sm:$0x1f]  ;;  %182 = vmatpush.msk.msra.mxu0 %vm67_vm0, %v59_v6  ;;  %s277_s0 = smov [#allocation7]   ;;  %s171_s23 = sshll.u32 %s312_s2, 4  ;;  %s172_s23 = int_to_ptr.hbm [resolvable:$true] %s171_s23 }
   0xe   :  { %132 = vmatpush.msra.mxu2 %v57_v2  ;;  %v55_v8 = vld [vmem:[#allocation5 + $0x60] sm:$0xff]  ;;  %v56_v9 = vld [vmem:[#allocation5 + $0x68] sm:$0xff]  ;;  %184 = vmatpush.msk.msra.mxu1 %vm67_vm0, %v60_v7  ;;  %v49_v10 = vld [vmem:[#allocation5 + $0x30] sm:$0xff]  ;;  %s169_s1 = sshll.u32 %s277_s0, 4  ;;  %s170_s1 = int_to_ptr.vmem [resolvable:$true] %s169_s1 }
   0xf   :  { %152 = vmatpush.msra.mxu3 %v58_v3  ;;  %v50_v11 = vld [vmem:[#allocation5 + $0x38] sm:$0xff]  ;;  %v51_v12 = vld [vmem:[#allocation5 + $0x40] sm:$0xff]  ;;  %v52_v13 = vld [vmem:[#allocation5 + $0x48] sm:$0xff]  ;;  %92 = vmatpush.msra.mxu0 %v55_v8 }
  0x10   :  { %133 = vmatpush.msra.mxu2 %v53_v4  ;;  %112 = vmatpush.msra.mxu1 %v56_v9  ;;  %v45_v14 = vld [vmem:[#allocation5 + $0x10] sm:$0xff]  ;;  %v46_v15 = vld [vmem:[#allocation5 + $0x18] sm:$0xff]  ;;  %v47_v17 = vld [vmem:[#allocation5 + $0x20] sm:$0xff] }
  0x11   :  { %153 = vmatpush.msra.mxu3 %v54_v5  ;;  %v42_v16 = vld [vmem:[#allocation2] sm:$0xff]  ;;  %93 = vmatpush.msra.mxu0 %v51_v12  ;;  %v48_v18 = vld [vmem:[#allocation5 + $0x28] sm:$0xff]  ;;  %v43_v19 = vld [vmem:[#allocation5] sm:$0xff] }
  0x12   :  { %134 = vmatpush.msra.mxu2 %v49_v10  ;;  %113 = vmatpush.msra.mxu1 %v52_v13  ;;  %v44_v20 = vld [vmem:[#allocation5 + $0x8] sm:$0xff] }
  0x13   :  { %154 = vmatpush.msra.mxu3 %v50_v11  ;;  %94 = vmatpush.msra.mxu0 %v47_v17 }
  0x14   :  { %135 = vmatpush.msra.mxu2 %v45_v14  ;;  %114 = vmatpush.msra.mxu1 %v48_v18 }
  0x15   :  { %155 = vmatpush.msra.mxu3 %v46_v15  ;;  %187 = vmatmul.msk.f32.vlgmr.msra.gmra.mxu2 %vm63_vm1, %v42_v16 }
  0x16   :  { %189 = vmatmul.msk.f32.vlgmr.msra.gmra.mxu3 %vm63_vm1, %v42_v16  ;;  %95 = vmatpush.msra.mxu0 %v43_v19 }
  0x17   :  { %115 = vmatpush.msra.mxu1 %v44_v20  ;;  %183 = vmatmul.msk.f32.vlgmr.msra.gmra.mxu0 %vm63_vm1, %v42_v16 }
  0x18   :  { %185 = vmatmul.msk.f32.vlgmr.msra.gmra.mxu1 %vm63_vm1, %v42_v16 }
  0x94   :  { %v97_v21 = vpop.f32.mrf.mxu0 }
  0x95   :  { %v117_v22 = vpop.f32.mrf.mxu1  ;;  %160 = vst [vmem:[#allocation7] sm:$0xff] %v97_v21 }
  0x96   :  { %161 = vst [vmem:[#allocation7 + $0x8] sm:$0xff] %v117_v22 }
  0x98   :  { %v137_v23 = vpop.f32.mrf.mxu2 }
  0x99   :  { %v157_v24 = vpop.f32.mrf.mxu3  ;;  %162 = vst [vmem:[#allocation7 + $0x10] sm:$0xff] %v137_v23 }
  0x9a   :  { %163 = vst [vmem:[#allocation7 + $0x18] sm:$0xff] %v157_v24 }
  0x9b   :  { %174 = dma.vmem_to_hbm [thread:$0]  %s170_s1, 512, %s172_s23, [#allocation4]  }
  0x9c   :  { %271 = dma.done.wait [#allocation4], 512  }
  0x9d   :  { %272 = vsyncadd [#allocation4], 4294966784 }
  0x9e   :  { %179 = vsyncpa [#allocation3], 1 }
  0x9f   :  { %180 = vsyncpa [#allocation6], 1 }
  0xa0   :  { %181 = vsyncpa [#allocation4], 1 }

</bundles_post_ra>
